<compile_context>
chip_gen: v6e
topology: v6e:2x2x1
jax: 0.10.0
libtpu: 0.0.40
codegen_flags: <defaults>
</compile_context>

<pallas_src>
import math

import jax
import jax.numpy as jnp
from jax.experimental import pallas as pl
from jax.experimental.pallas import tpu as pltpu


_NEG_BIG = -1e30      # finite mask-fill sentinel (avoids NaN on fully-masked rows)
_LN_EPS = 1e-5        # torch.nn.LayerNorm default eps


def _layer_norm(x, gamma, beta):
    mean = jnp.mean(x, axis=-1, keepdims=True)
    xc = x - mean
    var = jnp.mean(xc * xc, axis=-1, keepdims=True)
    return xc * jax.lax.rsqrt(var + _LN_EPS) * gamma + beta


def _compiler_params(dims):
    """Dimension semantics + a per-generation scoped-VMEM limit with headroom."""
    try:
        cap = getattr(pltpu.get_tpu_info(), "vmem_capacity_bytes", None)
    except Exception:
        cap = None
    if cap:
        vmem = min(int(cap) * 3 // 4, 100 * 1024 * 1024)
    else:
        vmem = 48 * 1024 * 1024
    vmem = max(vmem, 32 * 1024 * 1024)
    return pltpu.CompilerParams(dimension_semantics=dims, vmem_limit_bytes=vmem)


# ---------------------------------------------------------------------------
# Hoisted K/V projection kernel: KV = [LN](x_kv) @ Wkv + bkv   (computed once)
# ---------------------------------------------------------------------------
def _make_kv_proj_kernel(ln):
    if ln:
        def kernel(x_ref, g_ref, be_ref, wkv_ref, bkv_ref, o_ref):
            in_dtype = x_ref.dtype
            y = _layer_norm(x_ref[...].astype(jnp.float32), g_ref[...], be_ref[...])
            kv = (jnp.dot(y.astype(in_dtype), wkv_ref[...],
                          preferred_element_type=jnp.float32) + bkv_ref[...])
            o_ref[...] = kv.astype(o_ref.dtype)
    else:
        def kernel(x_ref, wkv_ref, bkv_ref, o_ref):
            kv = (jnp.dot(x_ref[...], wkv_ref[...],
                          preferred_element_type=jnp.float32) + bkv_ref[...])
            o_ref[...] = kv.astype(o_ref.dtype)
    return kernel


def _kv_proj_call(x_kv, wkv, bkv, gamma=None, beta=None, *, tkv, ln):
    B, Tk, E = x_kv.shape
    E2 = wkv.shape[1]
    tkv = min(tkv, Tk)
    assert Tk % tkv == 0

    x_spec = pl.BlockSpec((None, tkv, E), lambda b, j: (b, j, 0))

    def w_spec(shape):
        return pl.BlockSpec(shape, lambda b, j: (0, 0))

    in_specs = [x_spec]
    args = [x_kv]
    if ln:
        in_specs += [w_spec((1, E)), w_spec((1, E))]
        args += [gamma, beta]
    in_specs += [w_spec((E, E2)), w_spec((1, E2))]
    args += [wkv, bkv]

    return pl.pallas_call(
        _make_kv_proj_kernel(ln),
        out_shape=jax.ShapeDtypeStruct((B, Tk, E2), x_kv.dtype),
        grid_spec=pltpu.PrefetchScalarGridSpec(
            num_scalar_prefetch=0,
            grid=(B, Tk // tkv),
            in_specs=in_specs,
            out_specs=pl.BlockSpec((None, tkv, E2), lambda b, j: (b, j, 0))),
        compiler_params=_compiler_params(("parallel", "parallel")),
    )(*args)


# ---------------------------------------------------------------------------
# Fused (LayerNorm + q-proj + flash attention [+ out-proj] + residual) kernel.
# Consumes the pre-projected KV; grid = (batch, q_tiles, kv_tiles).
# ---------------------------------------------------------------------------
def _make_attn_kernel(*, num_heads, head_dim, emb, tk, out_proj):
    E, H = emb, head_dim

    def kernel(lens_ref, xq_ref, kv_ref, g_ref, be_ref, wq_ref, bq_ref, *rest):
        if out_proj:
            wo_ref, bo_ref, o_ref, q_sc, m_sc, l_sc, acc_sc = rest
        else:
            o_ref, q_sc, m_sc, l_sc, acc_sc = rest

        b = pl.program_id(0)
        j = pl.program_id(2)
        n_kv = pl.num_programs(2)
        in_dtype = xq_ref.dtype

        # ---- init (first kv tile of this (batch, q-tile)): LN + fused q proj ----
        @pl.when(j == 0)
        def _init():
            y = _layer_norm(xq_ref[...].astype(jnp.float32), g_ref[...], be_ref[...])
            # residual base (= LN(x)) stashed in the resident output block (no scratch)
            o_ref[...] = y.astype(o_ref.dtype)
            # fused all-head q projection; 1/sqrt(head_dim) already folded into wq/bq
            q = (jnp.dot(y.astype(in_dtype), wq_ref[...],
                         preferred_element_type=jnp.float32) + bq_ref[...]).astype(in_dtype)
            for h in range(num_heads):         # head-major scratch -> leading-axis slices
                q_sc[h] = q[:, h * H:(h + 1) * H]
            m_sc[...] = jnp.full_like(m_sc, _NEG_BIG)
            l_sc[...] = jnp.zeros_like(l_sc)
            acc_sc[...] = jnp.zeros_like(acc_sc)

        # ---- this kv tile (skipped entirely if it is all padding) ----
        @pl.when(j * tk < lens_ref[b])
        def _tile():
            kv = kv_ref[...]                   # (tk, 2E) pre-projected, in input dtype
            # padding mask rebuilt from the scalar-prefetched valid length (no dense mask DMA)
            key_pos = j * tk + jax.lax.broadcasted_iota(jnp.int32, (1, tk), 1)
            key_ok = key_pos < lens_ref[b]
            m_prev = m_sc[...]                 # one (tq, heads) load
            l_prev = l_sc[...]
            m_cols, l_cols = [], []
            for h in range(num_heads):         # static unroll over heads
                k_h = kv[:, h * H:(h + 1) * H]
                v_h = kv[:, E + h * H:E + (h + 1) * H]
                # q @ k^T via transposed-RHS contraction (no XLU transpose of k)
                s = jax.lax.dot_general(q_sc[h], k_h,
                                        dimension_numbers=(((1,), (1,)), ((), ())),
                                        preferred_element_type=jnp.float32)
                s = jnp.where(key_ok, s, _NEG_BIG)
                m_p = m_prev[:, h:h + 1]
                m_n = jnp.maximum(m_p, jnp.max(s, axis=-1, keepdims=True))
                alpha = jnp.exp(m_p - m_n)
                p = jnp.exp(s - m_n)
                l_cols.append(alpha * l_prev[:, h:h + 1] + jnp.sum(p, axis=-1, keepdims=True))
                m_cols.append(m_n)
                acc_sc[h] = alpha * acc_sc[h] + jnp.dot(
                    p.astype(in_dtype), v_h, preferred_element_type=jnp.float32)
            # one consolidated store per kv step (no per-head 1-lane masked stores)
            m_sc[...] = jnp.concatenate(m_cols, axis=1)
            l_sc[...] = jnp.concatenate(l_cols, axis=1)

        # ---- finalize on the last kv tile: deferred softmax normalization ----
        @pl.when(j == n_kv - 1)
        def _finalize():
            inv_l = pl.reciprocal(l_sc[...], approx=True)     # EUP slot, essentially free
            attn = jnp.concatenate(
                [acc_sc[h] * inv_l[:, h:h + 1] for h in range(num_heads)], axis=-1)
            if out_proj:
                attn = (jnp.dot(attn.astype(in_dtype), wo_ref[...],
                                preferred_element_type=jnp.float32) + bo_ref[...])
            o_ref[...] = (attn + o_ref[...].astype(jnp.float32)).astype(o_ref.dtype)

    return kernel


def _attention_call(x_q, kv, lens, gamma, beta, wq, bq, wo=None, bo=None, *,
                    num_heads, tq, tk, out_proj):
    """out = LN(x_q) + Attention(LN(x_q), pre-projected KV, key-padding mask from lens)."""
    B, Tq, E = x_q.shape
    _, Tk, E2 = kv.shape
    assert E2 == 2 * E and E % num_heads == 0
    tq = min(tq, Tq)
    tk = min(tk, Tk)
    assert Tq % tq == 0 and Tk % tk == 0
    H = E // num_heads
    grid = (B, Tq // tq, Tk // tk)

    kernel = _make_attn_kernel(num_heads=num_heads, head_dim=H, emb=E, tk=tk,
                               out_proj=out_proj)

    q_spec = pl.BlockSpec((None, tq, E), lambda b, i, j, lens: (b, i, 0))
    kv_spec = pl.BlockSpec((None, tk, E2), lambda b, i, j, lens: (b, j, 0))

    def w_spec(shape):
        # Grid-invariant weights: fetched once, never re-DMA'd.
        # TODO(synk): on v7x at large E, add pipeline_mode=pl.Buffered(1) or tile the
        # weight output dim so resident weights fit the 64 MiB VMEM budget.
        return pl.BlockSpec(shape, lambda b, i, j, lens: (0, 0))

    in_specs = [q_spec, kv_spec,
                w_spec((1, E)), w_spec((1, E)),      # LN gamma / beta
                w_spec((E, E)), w_spec((1, E))]      # fused Wq / bq (scale folded)
    args = [x_q, kv, gamma, beta, wq, bq]
    if out_proj:
        in_specs += [w_spec((E, E)), w_spec((1, E))]
        args += [wo, bo]

    return pl.pallas_call(
        kernel,
        out_shape=jax.ShapeDtypeStruct((B, Tq, E), x_q.dtype),
        grid_spec=pltpu.PrefetchScalarGridSpec(
            num_scalar_prefetch=1,                      # per-batch valid key lengths
            grid=grid,
            in_specs=in_specs,
            out_specs=pl.BlockSpec((None, tq, E), lambda b, i, j, lens: (b, i, 0)),
            scratch_shapes=[
                pltpu.VMEM((num_heads, tq, H), x_q.dtype),     # q (head-major, in dtype)
                pltpu.VMEM((tq, num_heads), jnp.float32),      # online-softmax running max
                pltpu.VMEM((tq, num_heads), jnp.float32),      # online-softmax running denom
                pltpu.VMEM((num_heads, tq, H), jnp.float32),   # unnormalized output acc
            ]),
        compiler_params=_compiler_params(("parallel", "parallel", "arbitrary")),
    )(lens, *args)


# ---------------------------------------------------------------------------
# Fused (LayerNorm + FeedForward + residual) kernel, intermediate dim tiled
# as a reduction grid axis with an f32 accumulator.
# ---------------------------------------------------------------------------
def _ffn_kernel(x_ref, g_ref, be_ref, w1_ref, b1_ref, w2_ref, b2_ref, o_ref, acc_sc):
    k = pl.program_id(2)
    n_k = pl.num_programs(2)
    in_dtype = x_ref.dtype

    @pl.when(k == 0)
    def _init():
        y = _layer_norm(x_ref[...].astype(jnp.float32), g_ref[...], be_ref[...])
        o_ref[...] = y.astype(o_ref.dtype)       # residual base (= LN(x)), kept resident
        acc_sc[...] = jnp.zeros_like(acc_sc)

    y = o_ref[...]                               # LN(x), resident across the k axis
    h = (jnp.dot(y.astype(in_dtype), w1_ref[...],
                 preferred_element_type=jnp.float32) + b1_ref[...])
    # TODO(synk): torch nn.GELU() defaults to the exact erf GELU; tanh approximation used.
    h = jax.nn.gelu(h, approximate=True)
    acc_sc[...] += jnp.dot(h.astype(in_dtype), w2_ref[...],
                           preferred_element_type=jnp.float32)

    @pl.when(k == n_k - 1)
    def _finalize():
        # TODO(synk): dropout omitted (inference / eval mode -> identity).
        o_ref[...] = (acc_sc[...] + b2_ref[...]
                      + o_ref[...].astype(jnp.float32)).astype(o_ref.dtype)


def _ffn_call(x, gamma, beta, w1, b1, w2, b2, *, tq, t_ff):
    B, T, E = x.shape
    inter = w1.shape[1]
    tq = min(tq, T)
    t_ff = min(t_ff, inter)
    assert T % tq == 0 and inter % t_ff == 0

    x_spec = pl.BlockSpec((None, tq, E), lambda b, i, k: (b, i, 0))

    def const_spec(shape):
        return pl.BlockSpec(shape, lambda b, i, k: (0, 0))

    return pl.pallas_call(
        _ffn_kernel,
        out_shape=jax.ShapeDtypeStruct((B, T, E), x.dtype),
        grid_spec=pltpu.PrefetchScalarGridSpec(
            num_scalar_prefetch=0,
            grid=(B, T // tq, inter // t_ff),
            in_specs=[x_spec,
                      const_spec((1, E)), const_spec((1, E)),
                      pl.BlockSpec((E, t_ff), lambda b, i, k: (0, k)),   # ff_w1 column tile
                      pl.BlockSpec((1, t_ff), lambda b, i, k: (0, k)),   # ff_b1 column tile
                      pl.BlockSpec((t_ff, E), lambda b, i, k: (k, 0)),   # ff_w2 row tile
                      const_spec((1, E))],
            out_specs=x_spec,
            scratch_shapes=[pltpu.VMEM((tq, E), jnp.float32)]),          # f32 accumulator
        compiler_params=_compiler_params(("parallel", "parallel", "arbitrary")),
    )(x, gamma, beta, w1, b1, w2, b2)


# ---------------------------------------------------------------------------
# Full DecoderLayer forward.
# ---------------------------------------------------------------------------
def decoder_layer(x, memory, dec_lens, enc_lens, p, *, num_heads,
                  tq=256, tk=512, t_ff=512):
    # x = LN1(x); x = x + MultiHeadSelfAttention(x, dec key-padding mask)
    kv_self = _kv_proj_call(x, p["sa_wkv"], p["sa_bkv"], p["ln1_g"], p["ln1_b"],
                            tkv=tk, ln=True)
    h1 = _attention_call(x, kv_self, dec_lens, p["ln1_g"], p["ln1_b"],
                         p["sa_wq"], p["sa_bq"], p["sa_wo"], p["sa_bo"],
                         num_heads=num_heads, tq=tq, tk=tk, out_proj=True)
    # x = LN2(x); x = x + CrossAttentionHead(x, memory, enc key-padding mask)
    # TODO(synk): the PyTorch spec builds CrossAttentionHead(config) and calls it with 4
    # args; interpreted as head_dim = hidden_size and mask = enc_mask so residual is valid.
    kv_cross = _kv_proj_call(memory, p["ca_wkv"], p["ca_bkv"], tkv=tk, ln=False)
    h2 = _attention_call(h1, kv_cross, enc_lens, p["ln2_g"], p["ln2_b"],
                         p["ca_wq"], p["ca_bq"], num_heads=1, tq=tq, tk=tk,
                         out_proj=False)
    # x = LN3(x); x = x + FeedForward(x)
    return _ffn_call(h2, p["ln3_g"], p["ln3_b"],
                     p["ff_w1"], p["ff_b1"], p["ff_w2"], p["ff_b2"],
                     tq=tq, t_ff=t_ff)


# ---------------------------------------------------------------------------
# Parameters (torch-style "raw" params for the reference, fused/folded for the kernels).
# ---------------------------------------------------------------------------
def init_raw_params(key, hidden, num_heads, intermediate):
    H = hidden // num_heads
    keys = iter(jax.random.split(key, 64))

    def linear(in_dim, out_dim):
        bound = 1.0 / math.sqrt(in_dim)
        w = jax.random.uniform(next(keys), (in_dim, out_dim), jnp.float32, -bound, bound)
        b = jax.random.uniform(next(keys), (1, out_dim), jnp.float32, -bound, bound)
        return w, b

    def ln():
        g = 1.0 + 0.1 * jax.random.normal(next(keys), (1, hidden), jnp.float32)
        b = 0.1 * jax.random.normal(next(keys), (1, hidden), jnp.float32)
        return g, b

    p = {"ln1": ln(), "ln2": ln(), "ln3": ln()}
    heads = []
    for _ in range(num_heads):
        wq, bq = linear(hidden, H)
        wk, bk = linear(hidden, H)
        wv, bv = linear(hidden, H)
        heads.append(dict(wq=wq, bq=bq, wk=wk, bk=bk, wv=wv, bv=bv))
    p["sa_heads"] = heads
    p["sa_wo"], p["sa_bo"] = linear(hidden, hidden)
    p["ca_wq"], p["ca_bq"] = linear(hidden, hidden)
    p["ca_wk"], p["ca_bk"] = linear(hidden, hidden)
    p["ca_wv"], p["ca_bv"] = linear(hidden, hidden)
    p["ff_w1"], p["ff_b1"] = linear(hidden, intermediate)
    p["ff_w2"], p["ff_b2"] = linear(intermediate, hidden)
    return p


def fuse_params(raw, hidden, num_heads):
    H = hidden // num_heads
    f = {}
    f["ln1_g"], f["ln1_b"] = raw["ln1"]
    f["ln2_g"], f["ln2_b"] = raw["ln2"]
    f["ln3_g"], f["ln3_b"] = raw["ln3"]
    wq = jnp.concatenate([h["wq"] for h in raw["sa_heads"]], axis=1)
    bq = jnp.concatenate([h["bq"] for h in raw["sa_heads"]], axis=1)
    wk = jnp.concatenate([h["wk"] for h in raw["sa_heads"]], axis=1)
    bk = jnp.concatenate([h["bk"] for h in raw["sa_heads"]], axis=1)
    wv = jnp.concatenate([h["wv"] for h in raw["sa_heads"]], axis=1)
    bv = jnp.concatenate([h["bv"] for h in raw["sa_heads"]], axis=1)
    q_scale = 1.0 / math.sqrt(H)                 # fold 1/sqrt(d_k) into Wq/bq
    f["sa_wq"], f["sa_bq"] = wq * q_scale, bq * q_scale
    f["sa_wkv"] = jnp.concatenate([wk, wv], axis=1)
    f["sa_bkv"] = jnp.concatenate([bk, bv], axis=1)
    f["sa_wo"], f["sa_bo"] = raw["sa_wo"], raw["sa_bo"]
    ca_scale = 1.0 / math.sqrt(hidden)           # cross-attn head_dim == hidden
    f["ca_wq"], f["ca_bq"] = raw["ca_wq"] * ca_scale, raw["ca_bq"] * ca_scale
    f["ca_wkv"] = jnp.concatenate([raw["ca_wk"], raw["ca_wv"]], axis=1)
    f["ca_bkv"] = jnp.concatenate([raw["ca_bk"], raw["ca_bv"]], axis=1)
    f["ff_w1"], f["ff_b1"] = raw["ff_w1"], raw["ff_b1"]
    f["ff_w2"], f["ff_b2"] = raw["ff_w2"], raw["ff_b2"]
    return f


# ---------------------------------------------------------------------------
# Pure-JAX reference reproducing the PyTorch forward (with dense masks).
# ---------------------------------------------------------------------------
def reference_decoder_layer(x, memory, dec_mask, enc_mask, raw):
    def ln(v, g, b):
        mean = jnp.mean(v, axis=-1, keepdims=True)
        var = jnp.mean((v - mean) ** 2, axis=-1, keepdims=True)
        return (v - mean) * jax.lax.rsqrt(var + _LN_EPS) * g + b

    def sdpa(q, k, v, mask):
        scores = jnp.einsum("bqd,bkd->bqk", q, k) / math.sqrt(q.shape[-1])
        scores = jnp.where(mask == 0, -jnp.inf, scores)
        w = jax.nn.softmax(scores, axis=-1)
        return jnp.einsum("bqk,bkd->bqd", w, v)

    g1, b1 = raw["ln1"]; g2, b2 = raw["ln2"]; g3, b3 = raw["ln3"]
    y = ln(x, g1, b1)
    head_outs = []
    for hp in raw["sa_heads"]:
        q = y @ hp["wq"] + hp["bq"]
        k = y @ hp["wk"] + hp["bk"]
        v = y @ hp["wv"] + hp["bv"]
        head_outs.append(sdpa(q, k, v, dec_mask))
    x1 = y + (jnp.concatenate(head_outs, axis=-1) @ raw["sa_wo"] + raw["sa_bo"])

    y2 = ln(x1, g2, b2)
    q = y2 @ raw["ca_wq"] + raw["ca_bq"]
    k = memory @ raw["ca_wk"] + raw["ca_bk"]
    v = memory @ raw["ca_wv"] + raw["ca_bv"]
    x2 = y2 + sdpa(q, k, v, enc_mask)

    y3 = ln(x2, g3, b3)
    h = jax.nn.gelu(y3 @ raw["ff_w1"] + raw["ff_b1"], approximate=True)
    return y3 + (h @ raw["ff_w2"] + raw["ff_b2"])


if __name__ == "__main__":
    B, Tq, Tm = 2, 32, 32
    hidden, num_heads, intermediate = 128, 4, 256
    # Small explicit tiles so the multi-tile paths (flash online softmax, padded-tile
    # skip, FFN intermediate reduction) are exercised; real sizes use the 256/512 defaults.
    tq, tk, t_ff = 16, 16, 128

    key = jax.random.PRNGKey(0)
    kx, km, kp = jax.random.split(key, 3)
    x = jax.random.normal(kx, (B, Tq, hidden), jnp.float32)
    memory = jax.random.normal(km, (B, Tm, hidden), jnp.float32)

    # Per-batch valid key lengths (padding masks); every row keeps >= 1 valid key.
    dec_lens = jnp.array([Tq, 21], dtype=jnp.int32)
    enc_lens = jnp.array([13, Tm], dtype=jnp.int32)

    raw = init_raw_params(kp, hidden, num_heads, intermediate)
    fused = fuse_params(raw, hidden, num_heads)

    out = decoder_layer(x, memory, dec_lens, enc_lens, fused,
                        num_heads=num_heads, tq=tq, tk=tk, t_ff=t_ff)
    out = jax.block_until_ready(out)

    # Dense masks equivalent to the prefetched lengths, for the reference.
    dec_mask = jnp.broadcast_to(
        (jnp.arange(Tq)[None, None, :] < dec_lens[:, None, None]).astype(jnp.int32),
        (B, Tq, Tq))
    enc_mask = jnp.broadcast_to(
        (jnp.arange(Tm)[None, None, :] < enc_lens[:, None, None]).astype(jnp.int32),
        (B, Tq, Tm))

    with jax.default_matmul_precision("highest"):
        ref = reference_decoder_layer(x, memory, dec_mask, enc_mask, raw)

    assert out.shape == (B, Tq, hidden)
    max_err = float(jnp.max(jnp.abs(out - ref)))
    # Tolerance covers default-precision MXU passes on f32 operands and the approx
    # EUP reciprocal used for softmax normalization; structural bugs are >> 1e-1.
    assert jnp.allclose(out, ref, atol=1e-2, rtol=1e-2), f"mismatch vs reference: {max_err}"
    print("KERNEL_OK")
</pallas_src>

<mosaic_0001>
module attributes {stable_mosaic.version = 11 : i64} {
  func.func @kernel(%arg0: i32, %arg1: i32, %arg2: memref<1x16x128xf32, #tpu.memory_space<vmem>>, %arg3: memref<1x128xf32, #tpu.memory_space<vmem>>, %arg4: memref<1x128xf32, #tpu.memory_space<vmem>>, %arg5: memref<128x256xf32, #tpu.memory_space<vmem>>, %arg6: memref<1x256xf32, #tpu.memory_space<vmem>>, %arg7: memref<1x16x256xf32, #tpu.memory_space<vmem>>) attributes {dimension_semantics = [#tpu.dimension_semantics<parallel>, #tpu.dimension_semantics<parallel>], iteration_bounds = array<i64: 2, 2>, scalar_prefetch = 0 : i64, scratch_operands = 0 : i64, tpu.core_type = #tpu.core_type<tc>, window_params = [{transform_indices = @transform_0, window_bounds = array<i64: 1, 16, 128>}, {pipeline_mode = #tpu.pipeline_mode<synchronous>, transform_indices = @transform_1, window_bounds = array<i64: 1, 128>}, {pipeline_mode = #tpu.pipeline_mode<synchronous>, transform_indices = @transform_2, window_bounds = array<i64: 1, 128>}, {pipeline_mode = #tpu.pipeline_mode<synchronous>, transform_indices = @transform_3, window_bounds = array<i64: 128, 256>}, {pipeline_mode = #tpu.pipeline_mode<synchronous>, transform_indices = @transform_4, window_bounds = array<i64: 1, 256>}, {transform_indices = @transform_5, window_bounds = array<i64: 1, 16, 256>}]} {
    %c0 = arith.constant 0 : index
    %c0_0 = arith.constant 0 : index
    %c0_1 = arith.constant 0 : index
    %0 = vector.load %arg2[%c0, %c0_0, %c0_1] : memref<1x16x128xf32, #tpu.memory_space<vmem>>, vector<1x16x128xf32>
    %1 = vector.shape_cast %0 : vector<1x16x128xf32> to vector<16x128xf32>
    %c0_2 = arith.constant 0 : index
    %c0_3 = arith.constant 0 : index
    %2 = vector.load %arg3[%c0_2, %c0_3] : memref<1x128xf32, #tpu.memory_space<vmem>>, vector<1x128xf32>
    %c0_4 = arith.constant 0 : index
    %c0_5 = arith.constant 0 : index
    %3 = vector.load %arg4[%c0_4, %c0_5] : memref<1x128xf32, #tpu.memory_space<vmem>>, vector<1x128xf32>
    %cst = arith.constant dense<0.000000e+00> : vector<16xf32>
    %4 = vector.multi_reduction <add>, %1, %cst [1] : vector<16x128xf32> to vector<16xf32>
    %5 = vector.shape_cast %4 : vector<16xf32> to vector<16x1xf32>
    %cst_6 = arith.constant 1.280000e+02 : f32
    %6 = vector.broadcast %cst_6 : f32 to vector<16x1xf32>
    %7 = arith.divf %5, %6 : vector<16x1xf32>
    %8 = vector.broadcast %7 : vector<16x1xf32> to vector<16x128xf32>
    %9 = arith.subf %1, %8 : vector<16x128xf32>
    %10 = arith.mulf %9, %9 : vector<16x128xf32>
    %cst_7 = arith.constant dense<0.000000e+00> : vector<16xf32>
    %11 = vector.multi_reduction <add>, %10, %cst_7 [1] : vector<16x128xf32> to vector<16xf32>
    %12 = vector.shape_cast %11 : vector<16xf32> to vector<16x1xf32>
    %cst_8 = arith.constant 1.280000e+02 : f32
    %13 = vector.broadcast %cst_8 : f32 to vector<16x1xf32>
    %14 = arith.divf %12, %13 : vector<16x1xf32>
    %cst_9 = arith.constant 9.99999974E-6 : f32
    %15 = vector.broadcast %cst_9 : f32 to vector<16x1xf32>
    %16 = arith.addf %14, %15 : vector<16x1xf32>
    %17 = math.rsqrt %16 : vector<16x1xf32>
    %18 = vector.broadcast %17 : vector<16x1xf32> to vector<16x128xf32>
    %19 = arith.mulf %9, %18 : vector<16x128xf32>
    %20 = vector.broadcast %2 : vector<1x128xf32> to vector<16x128xf32>
    %21 = arith.mulf %19, %20 : vector<16x128xf32>
    %22 = vector.broadcast %3 : vector<1x128xf32> to vector<16x128xf32>
    %23 = arith.addf %21, %22 : vector<16x128xf32>
    %c0_10 = arith.constant 0 : index
    %c0_11 = arith.constant 0 : index
    %24 = vector.load %arg5[%c0_10, %c0_11] : memref<128x256xf32, #tpu.memory_space<vmem>>, vector<128x256xf32>
    %cst_12 = arith.constant dense<0.000000e+00> : vector<16x256xf32>
    %25 = tpu.matmul %23, %24, %cst_12 {dimension_numbers = #tpu.dot_dimension_numbers<[1], [0], [0], [1], [0, 0, 1, 1], [], []>} : vector<16x128xf32>, vector<128x256xf32>, vector<16x256xf32> -> vector<16x256xf32>
    %c0_13 = arith.constant 0 : index
    %c0_14 = arith.constant 0 : index
    %26 = vector.load %arg6[%c0_13, %c0_14] : memref<1x256xf32, #tpu.memory_space<vmem>>, vector<1x256xf32>
    %27 = vector.broadcast %26 : vector<1x256xf32> to vector<16x256xf32>
    %28 = arith.addf %25, %27 : vector<16x256xf32>
    %c0_15 = arith.constant 0 : index
    %c0_16 = arith.constant 0 : index
    %c0_17 = arith.constant 0 : index
    %29 = vector.load %arg7[%c0_15, %c0_16, %c0_17] : memref<1x16x256xf32, #tpu.memory_space<vmem>>, vector<1x16x256xf32>
    %30 = vector.shape_cast %29 : vector<1x16x256xf32> to vector<16x256xf32>
    %31 = vector.shape_cast %28 : vector<16x256xf32> to vector<1x16x256xf32>
    tpu.vector_store %arg7[%c0_15, %c0_16, %c0_17], %31 {strides = array<i32>} : memref<1x16x256xf32, #tpu.memory_space<vmem>>, vector<1x16x256xf32>,
    return
  }
  func.func @transform_0(%arg0: i32, %arg1: i32) -> (i32, i32, i32) {
    %c0_i32 = arith.constant 0 : i32
    %c0_i32_0 = arith.constant 0 : i32
    return %arg0, %arg1, %c0_i32 : i32, i32, i32
  }
  func.func @transform_1(%arg0: i32, %arg1: i32) -> (i32, i32) {
    %c0_i32 = arith.constant 0 : i32
    %c0_i32_0 = arith.constant 0 : i32
    %c0_i32_1 = arith.constant 0 : i32
    return %c0_i32, %c0_i32_0 : i32, i32
  }
  func.func @transform_2(%arg0: i32, %arg1: i32) -> (i32, i32) {
    %c0_i32 = arith.constant 0 : i32
    %c0_i32_0 = arith.constant 0 : i32
    %c0_i32_1 = arith.constant 0 : i32
    return %c0_i32, %c0_i32_0 : i32, i32
  }
  func.func @transform_3(%arg0: i32, %arg1: i32) -> (i32, i32) {
    %c0_i32 = arith.constant 0 : i32
    %c0_i32_0 = arith.constant 0 : i32
    %c0_i32_1 = arith.constant 0 : i32
    return %c0_i32, %c0_i32_0 : i32, i32
  }
  func.func @transform_4(%arg0: i32, %arg1: i32) -> (i32, i32) {
    %c0_i32 = arith.constant 0 : i32
    %c0_i32_0 = arith.constant 0 : i32
    %c0_i32_1 = arith.constant 0 : i32
    return %c0_i32, %c0_i32_0 : i32, i32
  }
  func.func @transform_5(%arg0: i32, %arg1: i32) -> (i32, i32, i32) {
    %c0_i32 = arith.constant 0 : i32
    %c0_i32_0 = arith.constant 0 : i32
    return %arg0, %arg1, %c0_i32 : i32, i32, i32
  }
}

</mosaic_0001>

<bundles_post_ra>
// kernel: tpu_custom_call.1
= control target key start
LH: loop header
LB: loop body
LE: loop exit
PB: predicated region body
PF: predicated region fallthrough
CT: control target
= control target key end

     0   :  { %s1201_s0 = inlined_call_operand.hbm [shape: f32[2,32,128], index: 0, kind: input, shape index: {}]   ;;  %s1202_s1 = inlined_call_operand.vmem [shape: f32[1,128], index: 1, kind: input, shape index: {}]   ;;  %s1203_s2 = inlined_call_operand.hbm [shape: f32[1,128], index: 2, kind: input, shape index: {}]   ;;  %s1204_s3 = inlined_call_operand.hbm [shape: f32[128,256], index: 3, kind: input, shape index: {}]   ;;  %s1205_s4 = inlined_call_operand.vmem [shape: f32[1,256], index: 4, kind: input, shape index: {}]   ;;  %s1206_s5 = inlined_call_operand.hbm [shape: f32[2,32,256], index: 5, kind: output, shape index: {}]  }
   0x1   :  { %1220 = sst [smem:[#allocation17_spill]] %s1203_s2 }
   0x2   :  { %1221 = sst [smem:[#allocation18_spill]] %s1204_s3 }
   0x3   :  { %1222 = sst [smem:[#allocation19_spill]] %s1206_s5 }
   0x4   :  { %10 = vsyncpa [#allocation3], 0 }
   0x5   :  { %12 = vsyncpa [#allocation3 + $0x1], 0 }
   0x6   :  { %13 = vsyncpa [#allocation6], 0 }
   0x7   :  { %14 = vsyncpa [#allocation4], 0 }
   0x8   :  { %16 = vsyncpa [#allocation4 + $0x1], 0  ;;  %s974_s18 = smov 0   ;;  %s976_s19 = smov 0  }
   0x9   :  { %s978_s20 = smov 0   ;;  %s980_s21 = smov 0  }
   0xa   :  { %s982_s22 = smov 0   ;;  %s984_s23 = smov 0  }
   0xb   :  { %s986_s24 = smov 0   ;;  %s988_s25 = smov 0  }
   0xc LB: > { %1223 = sst [smem:[#allocation12_spill]] %s903_s18  ;;  %s584_s26 = sadd.s32 4294967295, %s931_s25   ;;  %s931_s25 = sphi %s988_s25, %s22_s25   ;;  %s927_s24 = sphi %s986_s24, %s1255_s24   ;;  %s923_s23 = sphi %s984_s23, %s1250_s23   ;;  %s919_s22 = sphi %s982_s22, %s1254_s22   ;;  %s915_s21 = sphi %s980_s21, %s1249_s21   ;;  %s911_s20 = sphi %s978_s20, %s1253_s20   ;;  %s907_s19 = sphi %s976_s19, %s1252_s19   ;;  %s903_s18 = sphi %s974_s18, %s1251_s18  }
   0xd   : > { %1224 = sst [smem:[#allocation13_spill]] %s923_s23  ;;  %s585_s27 = sadd.s32 4294967294, %s931_s25  }
   0xe   : > { %1225 = sst [smem:[#allocation14_spill]] %s931_s25  ;;  %p50_p0 = scmp.ne.s32.totalorder %s911_s20, %s907_s19 }
   0xf   : > { %p51_p1 = scmp.eq.s32.totalorder %s931_s25, 0  ;;  %p56_p2 = scmp.ne.s32.totalorder %s907_s19, %s903_s18 }
  0x10   : > { %p1022_p3 = scmp.eq.s32.totalorder %s584_s26, 0  ;;  %p166_p4 = scmp.eq.s32.totalorder %s584_s26, 3 }
  0x11   : > { %p1026_p5 = por %p51_p1, %p50_p0  ;;  %p172_p6 = scmp.eq.s32.totalorder %s585_s27, 3 }
  0x12   : > { %s1226_s29 = scalar_select %p1022_p3, 1, 0 }
  0x13   : > { %p1032_p7 = por %p1022_p3, %p56_p2  ;;  %p1036_p8 = por %p166_p4, %p50_p0 }
  0x14   : > { %p1040_p9 = por %p172_p6, %p56_p2  ;;  %p586_p10 = scmp.ge.s32.totalorder %s931_s25, 1 }
  0x15   : > { %s1228_s6 = scalar_select %p1032_p7, 1, 0 }
  0x16   : > { %s1229_s7 = scalar_select %p1036_p8, 1, 0 }
  0x17   : > { %s1230_s8 = scalar_select %p1040_p9, 1, 0 }
  0x18   : > { %p179_p11 = scmp.lt.s32.totalorder %s931_s25, 5  ;;  %s933_s10 = smov [#allocation5]  }
  0x19   : > { %1231 = sst [smem:[#allocation15_spill]] %s1230_s8  ;;  %s195_s11 = sshll.u32 %s933_s10, 4  ;;  %s196_s11 = int_to_ptr.vmem [resolvable:$true] %s195_s11 }
  0x1a   : > { %p1046_p12 = pnand %p586_p10, %p179_p11  ;;  %p670_p13 = scmp.lt.s32.totalorder %s931_s25, 4 }
  0x1b   : > { %s934_s13 = smov [#allocation7]   ;;  %s762_s16 = scalar_lea.vmem %s196_s11, 16 }
  0x1c   : > { %s1232_s9 = scalar_select %p1046_p12, 1, 0 }
  0x1d   : > { %p653_p0 = pneg %p1046_p12  ;;  %p1055_p1 = pnand %p670_p13, %p1026_p5 }
  0x1e   : > { %s205_s14 = sshll.u32 %s934_s13, 4  ;;  %p763_p6 = scmp.ne.s32.totalorder %s196_s11, %s762_s16  ;;  %s206_s14 = int_to_ptr.vmem [resolvable:$true] %s205_s14 }
  0x1f   : > { %s1233_s12 = scalar_select %p1055_p1, 1, 0 }
  0x20   : > { %p1061_p2 = pnand %p653_p0, %p1022_p3  ;;  %s769_s17 = scalar_lea.vmem %s196_s11, 32 }
  0x21   : > { %p770_p11 = scmp.lt.s32.totalorder %s196_s11, %s196_s11  ;;  %p771_p13 = scmp.lt.s32.totalorder %s769_s17, %s762_s16 }
  0x22   : > { %p753_p4 = pneg %p1061_p2 }
  0x23   : > { %p772_p9 = por %p771_p13, %p770_p11 }
  0x24   : > { %p765_p5 = pnand %p763_p6, %p753_p4 }
  0x26   : > { %p766_p10 = pneg %p765_p5 }
  0x28   : > { %p773_p8 = pnand %p772_p9, %p766_p10 }
  0x2a   : > { %776 = shalt.err (!%p773_p8)
}
  0x2b   : > { %s1235_s2 = sld [smem:[#allocation17_spill]]  ;;  %s788_s30 = scalar_lea.vmem %s206_s14, 4096 }
  0x2c   : > { %p789_p0 = scmp.ne.s32.totalorder %s206_s14, %s788_s30  ;;  %p796_p5 = scmp.lt.s32.totalorder %s206_s14, %s206_s14 }
  0x2d   : > { %p797_p7 = scmp.lt.s32.totalorder %s788_s30, %s788_s30 }
  0x2e   : > { %p791_p3 = pnand %p789_p0, %p753_p4 }
  0x2f   : > { %p798_p12 = por %p797_p7, %p796_p5 }
  0x30   : > { %p792_p6 = pneg %p791_p3 }
  0x31   : > { %656 = dma.hbm_to_vmem [thread:$0]  (!%p1061_p2), %s1235_s2, 16, %s196_s11, [#allocation6]  }
  0x32   : > { %p799_p1 = pnand %p798_p12, %p792_p6 }
  0x34   : > { %802 = shalt.err (!%p799_p1)
}
  0x35   : > { %s935_s10 = smov 256   ;;  %s936_s11 = smov 16  }
  0x36   : > { %s1236_s3 = sld [smem:[#allocation18_spill]]  ;;  %s31_s17 = sadd.s32 1, %s923_s23 }
  0x37   : > { %s34_s26 = sadd.s32 1, %s927_s24  ;;  %p32_p3 = scmp.ge.s32.totalorder %s31_s17, 2 }
  0x38   : > { %s222_s27 = sand.u32 1, %s911_s20   ;;  %s591_s15 = sshll.u32 %s923_s23, 1 }
  0x39   : > { %s590_s30 = sshll.u32 %s222_s27, 4  ;;  %s1257_s17 = smov (%p32_p3, %s31_s17), 0 }
  0x3a   : > { %1237 = sst [smem:[#allocation16_spill]] %s1257_s17  ;;  %s1259_s26 = smov (!%p32_p3, %s34_s26), %s927_s24 }
  0x3b   : > { %s39_s28 = ssub.s32 %s923_s23, %s1257_s17  ;;  %p36_p7 = scmp.ge.s32.totalorder %s1259_s26, 2 }
  0x3c   : > { %659 = dma.hbm_to_vmem [thread:$0]  (!%p1061_p2), %s1236_s3, 4096, %s206_s14, [#allocation6], %s935_s10, %s935_s10, %s936_s11  }
  0x3d   : > { %s592_s2 = sshll.u32 %s927_s24, 2  ;;  %s226_s8 = scalar_lea.vmem [#allocation2], %s590_s30 }
  0x3e   : > { %s235_s13 = sshll.u32 %s226_s8, 4  ;;  %s1261_s26 = smov (%p36_p7, %s1259_s26), 0  ;;  %s236_s13 = int_to_ptr.vmem [resolvable:$true] %s235_s13 }
  0x3f   : > { %s232_s14 = sadd.s32 %s592_s2, %s591_s15  ;;  %s38_s10 = ssub.s32 %s927_s24, %s1261_s26 }
  0x40   : > { %s593_s11 = sshll.u32 %s232_s14, 7  ;;  %s40_s16 = sor.u32 %s39_s28, %s38_s10 }
  0x41   : > { %s234_s25 = scalar_lea.hbm %s1201_s0, %s593_s11  ;;  %p41_p8 = scmp.eq.s32.totalorder %s40_s16, 0 }
  0x42   : > { %s1238_s17 = sadd.s32 1, %s911_s20  ;;  %s223_s23 = scalar_lea.sflag [#allocation3], %s222_s27 }
  0x43   : > { %s1103_s5 = scalar_select %p41_p8, %s911_s20, %s1238_s17  }
  0x44   : > { %p1239_p9 = scmp.ne.s32.totalorder %s1233_s12, 0  ;;  %s816_s8 = scalar_lea.vmem %s236_s13, 256 }
  0x45   : > { %p817_p1 = scmp.ne.s32.totalorder %s236_s13, %s816_s8  ;;  %s937_s2 = smov [#allocation2]  }
  0x46   : > { %p805_p12 = pneg %p1239_p9  ;;  %s821_s30 = sshll.u32 %s937_s2, 4  ;;  %s822_s30 = int_to_ptr.vmem [resolvable:$false] %s821_s30 }
  0x47   : > { %s823_s15 = scalar_lea.vmem %s822_s30, 512  ;;  %p824_p10 = scmp.lt.s32.totalorder %s236_s13, %s822_s30 }
  0x48   : > { %p819_p2 = pnand %p817_p1, %p805_p12  ;;  %p825_p11 = scmp.lt.s32.totalorder %s823_s15, %s816_s8 }
  0x4a   : > { %p820_p4 = pneg %p819_p2  ;;  %p826_p13 = por %p825_p11, %p824_p10 }
  0x4c   : > { %p827_p0 = pnand %p826_p13, %p820_p4 }
  0x4e   : > { %830 = shalt.err (!%p827_p0)
}
  0x4f   : > { %s938_s3 = smov 128   ;;  %s939_s18 = smov 8  }
  0x50   : > { %663 = dma.hbm_to_vmem [thread:$0]  (!%p1239_p9), %s234_s25, 256, %s236_s13, %s223_s23, %s938_s3, %s938_s3, %s939_s18  }
  0x51   : > { %p1240_p6 = scmp.ne.s32.totalorder %s1232_s9, 0 }
  0x52   : > { %s1112_s28 = sand.u32 (!%p1240_p6), 1, %s907_s19   ;;  %p1241_p5 = scmp.ne.s32.totalorder (!%p1240_p6), %s1228_s6, 0 }
  0x53   : > { %247 = sbr.rel (%p1240_p6) target bundleno = 614 (0x266), region = 40  ;;  %s595_s17 = sshll.u32 (!%p1240_p6), %s1112_s28, 4 }
  0x54   : > { %s250_s27 = scalar_lea.sflag (!%p1240_p6), [#allocation3], %s1112_s28  ;;  %s253_s14 = scalar_lea.vmem (!%p1240_p6), [#allocation2], %s595_s17 }
  0x58   : > { %890 = dma.done.wait (%p1241_p5), %s250_s27, 256  }
  0x59   : > { %892 = vsyncadd (%p1241_p5), %s250_s27, 4294967040  ;;  %p1242_p3 = scmp.ne.s32.totalorder %s1226_s29, 0 }
  0x5b   : > { %894 = dma.done.wait (%p1242_p3), [#allocation6], 4112  }
  0x5c   : > { %896 = vsyncadd (%p1242_p3), [#allocation6], 4294963184  ;;  %v290_v0 = vld [vmem:[%s253_s14] sm:$0xff]  ;;  %v291_v1 = vld [vmem:[%s253_s14 + $0x8] sm:$0xff]  ;;  %v940_v42 = vmov 0.0   ;;  %v367_v59 = vlaneseq  ;;  %s598_s9 = sshll.u32 %s1112_s28, 5 }
  0x5d   : > { %294 = vadd.xlane.f32.xlu0 %v290_v0  ;;  %v364_v2 = vld [vmem:[#allocation7 + $0xf8] sm:$0xff]  ;;  %v363_v3 = vld [vmem:[#allocation7 + $0xf0] sm:$0xff]  ;;  %v362_v4 = vld [vmem:[#allocation7 + $0xe8] sm:$0xff]  ;;  %441 = vmatprep.mubr.f32.mxu0 %v940_v42  ;;  %s608_s12 = sshll.u32 %s915_s21, 2  ;;  %s604_s13 = sshll.u32 %s919_s22, 3 }
  0x5e   : > { %377 = vmatprep.subr.mxu0 %v364_v2  ;;  %v361_v5 = vld [vmem:[#allocation7 + $0xe0] sm:$0xff]  ;;  %609 = vmatprep.subr.mxu1 %v364_v2  ;;  %v360_v6 = vld [vmem:[#allocation7 + $0xd8] sm:$0xff]  ;;  %v359_v7 = vld [vmem:[#allocation7 + $0xd0] sm:$0xff]  ;;  %v368_v60 = vshrl.u32 %v367_v59, 7  ;;  %s472_s10 = sadd.s32 %s608_s12, %s604_s13  ;;  %s287_s11 = scalar_lea.vmem [#allocation8], %s598_s9 }
  0x5f   : > { %378 = vmatpush1.msra.mxu0 %v363_v3  ;;  %625 = vmatpush1.msra.mxu1 %v363_v3  ;;  %v358_v8 = vld [vmem:[#allocation7 + $0xc8] sm:$0xff]  ;;  %v357_v9 = vld [vmem:[#allocation7 + $0xc0] sm:$0xff]  ;;  %v356_v18 = vld [vmem:[#allocation7 + $0xb8] sm:$0xff]  ;;  %s475_s16 = sshll.u32 %s287_s11, 4  ;;  %s605_s8 = sshll.u32 %s472_s10, 7  ;;  %s1143_s16 = int_to_ptr.vmem [resolvable:$true] %s475_s16 }
  0x60   : > { %379 = vmatprep.subr.mxu0 %v362_v4  ;;  %610 = vmatprep.subr.mxu1 %v362_v4  ;;  %v355_v19 = vld [vmem:[#allocation7 + $0xb0] sm:$0xff]  ;;  %v354_v20 = vld [vmem:[#allocation7 + $0xa8] sm:$0xff]  ;;  %v353_v21 = vld [vmem:[#allocation7 + $0xa0] sm:$0xff]  ;;  %v369_v61 = vsub.s32 0, %v368_v60  ;;  %v373_v63 = vsub.s32 1, %v368_v60  ;;  %s1243_s2 = sld [smem:[#allocation19_spill]] }
  0x61   : > { %296 = vadd.xlane.f32.xlu0 %v291_v1  ;;  %380 = vmatpush1.msra.mxu0 %v361_v5  ;;  %v352_v22 = vld [vmem:[#allocation7 + $0x98] sm:$0xff]  ;;  %v351_v23 = vld [vmem:[#allocation7 + $0x90] sm:$0xff]  ;;  %v350_v24 = vld [vmem:[#allocation7 + $0x88] sm:$0xff]  ;;  %s459_s15 = scalar_lea.sflag [#allocation4], %s1112_s28  ;;  %s831_s3 = scalar_lea.vmem %s1143_s16, 512 }
  0x62   : > { %626 = vmatpush1.msra.mxu1 %v361_v5  ;;  %381 = vmatprep.subr.mxu0 %v360_v6  ;;  %v349_v25 = vld [vmem:[#allocation7 + $0x80] sm:$0xff]  ;;  %v348_v26 = vld [vmem:[#allocation7 + $0x78] sm:$0xff]  ;;  %v347_v27 = vld [vmem:[#allocation7 + $0x70] sm:$0xff]  ;;  %p832_p7 = scmp.ne.s32.totalorder %s1143_s16, %s831_s3  ;;  %p1244_p8 = scmp.ne.s32.totalorder %s1229_s7, 0 }
  0x63   : > { %611 = vmatprep.subr.mxu1 %v360_v6  ;;  %382 = vmatpush1.msra.mxu0 %v359_v7  ;;  %v346_v28 = vld [vmem:[#allocation7 + $0x68] sm:$0xff]  ;;  %v345_v29 = vld [vmem:[#allocation7 + $0x60] sm:$0xff]  ;;  %v344_v30 = vld [vmem:[#allocation7 + $0x58] sm:$0xff]  ;;  %s941_s18 = smov [#allocation8]  }
  0x64   : > { %627 = vmatpush1.msra.mxu1 %v359_v7  ;;  %383 = vmatprep.subr.mxu0 %v358_v8  ;;  %v343_v31 = vld [vmem:[#allocation7 + $0x50] sm:$0xff]  ;;  %v342_v32 = vld [vmem:[#allocation7 + $0x48] sm:$0xff]  ;;  %v341_v33 = vld [vmem:[#allocation7 + $0x40] sm:$0xff]  ;;  %p833_p9 = pnand %p832_p7, %p1244_p8  ;;  %s835_s17 = sshll.u32 %s941_s18, 4  ;;  %s836_s17 = int_to_ptr.vmem [resolvable:$false] %s835_s17 }
  0x65   : > { %612 = vmatprep.subr.mxu1 %v358_v8  ;;  %384 = vmatpush1.msra.mxu0 %v357_v9  ;;  %v340_v34 = vld [vmem:[#allocation7 + $0x38] sm:$0xff]  ;;  %v339_v35 = vld [vmem:[#allocation7 + $0x30] sm:$0xff]  ;;  %v338_v36 = vld [vmem:[#allocation7 + $0x28] sm:$0xff]  ;;  %s837_s27 = scalar_lea.vmem %s836_s17, 1024  ;;  %p838_p1 = scmp.lt.s32.totalorder %s1143_s16, %s836_s17 }
  0x66   : > { %628 = vmatpush1.msra.mxu1 %v357_v9  ;;  %385 = vmatprep.subr.mxu0 %v356_v18  ;;  %v337_v37 = vld [vmem:[#allocation7 + $0x20] sm:$0xff]  ;;  %v336_v38 = vld [vmem:[#allocation7 + $0x18] sm:$0xff]  ;;  %v335_v39 = vld [vmem:[#allocation7 + $0x10] sm:$0xff]  ;;  %s1148_s30 = scalar_lea.hbm %s1243_s2, %s605_s8  ;;  %p834_p12 = pneg %p833_p9 }
  0x67   : > { %613 = vmatprep.subr.mxu1 %v356_v18  ;;  %386 = vmatpush1.msra.mxu0 %v355_v19  ;;  %v334_v40 = vld [vmem:[#allocation7 + $0x8] sm:$0xff]  ;;  %v333_v41 = vld [vmem:[#allocation7] sm:$0xff]  ;;  %v599_v50 = vld [vmem:[%s1202_s1] ss:$0 sm:$0xff]  ;;  %p839_p2 = scmp.lt.s32.totalorder %s837_s27, %s831_s3 }
  0x68   : > { %629 = vmatpush1.msra.mxu1 %v355_v19  ;;  %387 = vmatprep.subr.mxu0 %v354_v20  ;;  %v600_v52 = vld [vmem:[#allocation5] ss:$0 sm:$0xff] }
  0x69   : > { %614 = vmatprep.subr.mxu1 %v354_v20  ;;  %388 = vmatpush1.msra.mxu0 %v353_v21  ;;  %v365_v62 = vld [vmem:[%s1205_s4] sm:$0x3]  ;;  %p840_p4 = por %p839_p2, %p838_p1 }
  0x6a   : > { %630 = vmatpush1.msra.mxu1 %v353_v21  ;;  %389 = vmatprep.subr.mxu0 %v352_v22 }
  0x6b   : > { %615 = vmatprep.subr.mxu1 %v352_v22  ;;  %390 = vmatpush1.msra.mxu0 %v351_v23  ;;  %p841_p10 = pnand %p840_p4, %p834_p12 }
  0x6c   : > { %631 = vmatpush1.msra.mxu1 %v351_v23  ;;  %391 = vmatprep.subr.mxu0 %v350_v24 }
  0x6d   : > { %616 = vmatprep.subr.mxu1 %v350_v24  ;;  %392 = vmatpush1.msra.mxu0 %v349_v25 }
  0x6e   : > { %632 = vmatpush1.msra.mxu1 %v349_v25  ;;  %393 = vmatprep.subr.mxu0 %v348_v26 }
  0x6f   : > { %617 = vmatprep.subr.mxu1 %v348_v26  ;;  %394 = vmatpush1.msra.mxu0 %v347_v27 }
  0x70   : > { %633 = vmatpush1.msra.mxu1 %v347_v27  ;;  %395 = vmatprep.subr.mxu0 %v346_v28 }
  0x71   : > { %618 = vmatprep.subr.mxu1 %v346_v28  ;;  %396 = vmatpush1.msra.mxu0 %v345_v29 }
  0x72   : > { %634 = vmatpush1.msra.mxu1 %v345_v29  ;;  %397 = vmatprep.subr.mxu0 %v344_v30 }
  0x73   : > { %619 = vmatprep.subr.mxu1 %v344_v30  ;;  %398 = vmatpush1.msra.mxu0 %v343_v31 }
  0x74   : > { %635 = vmatpush1.msra.mxu1 %v343_v31  ;;  %399 = vmatprep.subr.mxu0 %v342_v32 }
  0x75   : > { %620 = vmatprep.subr.mxu1 %v342_v32  ;;  %400 = vmatpush1.msra.mxu0 %v341_v33 }
  0x76   : > { %636 = vmatpush1.msra.mxu1 %v341_v33  ;;  %401 = vmatprep.subr.mxu0 %v340_v34 }
  0x77   : > { %621 = vmatprep.subr.mxu1 %v340_v34  ;;  %402 = vmatpush1.msra.mxu0 %v339_v35 }
  0x78   : > { %637 = vmatpush1.msra.mxu1 %v339_v35  ;;  %403 = vmatprep.subr.mxu0 %v338_v36 }
  0x79   : > { %622 = vmatprep.subr.mxu1 %v338_v36  ;;  %404 = vmatpush1.msra.mxu0 %v337_v37 }
  0x7a   : > { %638 = vmatpush1.msra.mxu1 %v337_v37  ;;  %405 = vmatprep.subr.mxu0 %v336_v38 }
  0x7b   : > { %406 = vmatpush1.msra.mxu0 %v335_v39  ;;  %623 = vmatprep.subr.mxu1 %v336_v38 }
  0x7c   : > { %407 = vmatprep.subr.mxu0 %v334_v40  ;;  %639 = vmatpush1.msra.mxu1 %v335_v39 }
  0x7d   : > { %408 = vmatpush1.msra.mxu0 %v333_v41  ;;  %624 = vmatprep.subr.mxu1 %v334_v40 }
  0x7e   : > { %640 = vmatpush1.msra.mxu1 %v333_v41  ;;  %447 = vmatprep.mubr.f32.mxu1 %v940_v42 }
  0xe6   : > { %v295_v10 = vpop.xlane.xlu0 %294 }
  0xe7   : > { %v299_v11 = vmul.f32 0.0078125, %v295_v10 }
  0xe9   : > { %v1124_v12 = vsub.f32 %v290_v0, %v299_v11  ;;  %v370_v0 = vrot.slane %v365_v62, %v369_v61 }
  0xea   : > { %v297_v13 = vpop.xlane.xlu0 %296 }
  0xeb   : > { %v300_v14 = vmul.f32 0.0078125, %v297_v13  ;;  %v303_v15 = vmul.f32 %v1124_v12, %v1124_v12 }
  0xed   : > { %v1128_v16 = vsub.f32 %v291_v1, %v300_v14  ;;  %305 = vadd.xlane.f32.xlu1 %v303_v15  ;;  %v374_v1 = vrot.slane %v365_v62, %v373_v63 }
  0xef   : > { %v304_v17 = vmul.f32 %v1128_v16, %v1128_v16 }
  0xf1   : > { %307 = vadd.xlane.f32.xlu1 %v304_v17 }
 0x176   : > { %v306_v43 = vpop.xlane.xlu1 %305 }
 0x177   : > { %v309_v44 = vmul.f32 0.0078125, %v306_v43 }
 0x179   : > { %v311_v45 = vadd.f32 1e-05, %v309_v44 }
 0x17a   : > { %v308_v46 = vpop.xlane.xlu1 %307 }
 0x17b   : > { %747 = vrsqrt.f32 %v311_v45  ;;  %v310_v47 = vmul.f32 0.0078125, %v308_v46 }
 0x17d   : > { %v312_v48 = vadd.f32 1e-05, %v310_v47 }
 0x17f   : > { %749 = vrsqrt.f32 %v312_v48 }
 0x188   : > { %v748_v49 = vpop.eup %747 }
 0x189   : > { %v315_v51 = vmul.f32 %v748_v49, %v1124_v12 }
 0x18b   : > { %v323_v53 = vmul.f32 %v599_v50, %v315_v51 }
 0x18c   : > { %v750_v54 = vpop.eup %749 }
 0x18d   : > { %v331_v55 = vadd.f32 %v600_v52, %v323_v53  ;;  %v316_v56 = vmul.f32 %v750_v54, %v1128_v16 }
 0x18f   : > { %442 = vmatmul.mubr.f32.vlgmr.msra.gmra.mxu0 %v331_v55  ;;  %v324_v57 = vmul.f32 %v599_v50, %v316_v56 }
 0x191   : > { %v332_v58 = vadd.f32 %v600_v52, %v324_v57 }
 0x193   : > { %448 = vmatmul.mubr.f32.vlgmr.msra.gmra.mxu1 %v332_v58 }
 0x24f   : > { %v443_v2 = vpop.f32.mrf.mxu0 }
 0x250   : > { %v444_v3 = vadd.f32 %v443_v2, %v370_v0 }
 0x251   : > { %v445_v4 = vpop.f32.mrf.mxu0 }
 0x252   : > { %454 = vst [vmem:[%s287_s11] sm:$0xff] %v444_v3  ;;  %v446_v5 = vadd.f32 %v445_v4, %v374_v1 }
 0x253   : > { %v449_v6 = vpop.f32.mrf.mxu1 }
 0x254   : > { %455 = vst [vmem:[%s287_s11 + $0x8] sm:$0xff] %v446_v5  ;;  %v450_v7 = vadd.f32 %v449_v6, %v370_v0 }
 0x255   : > { %v451_v8 = vpop.f32.mrf.mxu1 }
 0x256   : > { %456 = vst [vmem:[%s287_s11 + $0x10] sm:$0xff] %v450_v7  ;;  %v452_v9 = vadd.f32 %v451_v8, %v374_v1 }
 0x258   : > { %457 = vst [vmem:[%s287_s11 + $0x18] sm:$0xff] %v452_v9 }
 0x259   : > { %844 = shalt.err (!%p841_p10)
}
 0x25a   : > { %s845_s14 = scalar_lea.hbm %s1148_s30, 512  ;;  %s849_s29 = scalar_lea.hbm %s1243_s2, 2048 }
 0x25b   : > { %p846_p11 = scmp.ne.s32.totalorder %s1148_s30, %s845_s14  ;;  %p850_p6 = scmp.lt.s32.totalorder %s1148_s30, %s1243_s2 }
 0x25c   : > { %p851_p5 = scmp.lt.s32.totalorder %s849_s29, %s845_s14 }
 0x25d   : > { %p847_p13 = pnand %p846_p11, %p1244_p8 }
 0x25e   : > { %p852_p3 = por %p851_p5, %p850_p6 }
 0x25f   : > { %p848_p0 = pneg %p847_p13 }
 0x261   : > { %p853_p7 = pnand %p852_p3, %p848_p0 }
 0x263   : > { %856 = shalt.err (!%p853_p7)
}
 0x264   : > { %s942_s12 = smov 256   ;;  %s943_s13 = smov 16  }
 0x265   : > { %651 = dma.vmem_to_hbm [thread:$0]  (%p1244_p8), %s1143_s16, 512, %s1148_s30, %s459_s15, %s942_s12, %s942_s12, %s943_s13  }
 0x266 PF: > { %s1245_s10 = sld [smem:[#allocation14_spill]] }
 0x267   : > { %s1246_s11 = sld [smem:[#allocation12_spill]] }
 0x268   : > { %s1247_s8 = sld [smem:[#allocation15_spill]] }
 0x26c   : > { %p673_p9 = scmp.ge.s32.totalorder %s1245_s10, 2 }
 0x26d   : > { %s490_s21 = sand.u32 1, %s1246_s11  }
 0x26e   : > { %p1248_p12 = scmp.ne.s32.totalorder %s1247_s8, 0  ;;  %s491_s22 = scalar_lea.sflag [#allocation4], %s490_s21 }
 0x270   : > { %p665_p1 = pnand %p673_p9, %p1248_p12 }
 0x272   : > { %p666_p2 = pneg %p665_p1 }
 0x274   : > { %898 = dma.done.wait (%p666_p2), %s491_s22, 512  }
 0x275   : > { %900 = vsyncadd (%p666_p2), %s491_s22, 4294966784  ;;  %s22_s25 = sadd.s32 1, %s1245_s10   ;;  %s1249_s21 = sld [smem:[#allocation13_spill]] }
 0x276   : > { %p19_p4 = scmp.ge.s32.totalorder %s22_s25, 6   ;;  %s1250_s23 = sld [smem:[#allocation16_spill]] }
 0x277   : > { %s1251_s18 = smov %s907_s19  ;;  %s1252_s19 = smov %s911_s20 }
 0x278   : > { %s1253_s20 = smov %s1103_s5  ;;  %s1254_s22 = smov %s927_s24 }
 0x279   : > { %s1255_s24 = smov %s1261_s26  ;;  %21 = sbr.rel (!%p19_p4) target bundleno = 12 (0xc), region = 93 }
 0x27e   :  { %496 = vsyncpa [#allocation3], 1 }
 0x27f   :  { %498 = vsyncpa [#allocation3 + $0x1], 1 }
 0x280   :  { %499 = vsyncpa [#allocation6], 1 }
 0x281   :  { %500 = vsyncpa [#allocation4], 1 }
 0x282   :  { %502 = vsyncpa [#allocation4 + $0x1], 1 }

</bundles_post_ra>
